<compile_context>
chip_gen: v5e
topology: v5e:2x2
jax: 0.10.0
libtpu: 0.0.40
codegen_flags: <defaults>
</compile_context>

<pallas_src>
from dataclasses import dataclass
from typing import Optional, Tuple, Union

import jax
import jax.numpy as jnp
from jax.experimental import pallas as pl
from jax.experimental.pallas import tpu as pltpu


@dataclass
class ModulationOut:
    shift: jax.Array  # (B, 1, dim)
    scale: jax.Array  # (B, 1, dim)
    gate: jax.Array   # (B, 1, dim)


def _modulation_tiled_kernel(vec_ref, w_ref, b_ref, out_ref):
    """One (chunk, column-tile) grid step: SiLU + (B,dim)@(dim,TN) + bias."""
    v = vec_ref[...].astype(jnp.float32)
    # SiLU in f32 (B x dim is tiny; recomputing per tile is free under the DMA).
    act = (v * jax.nn.sigmoid(v)).astype(w_ref.dtype)
    # Feed the weight tile in its native dtype; accumulate in f32 on the MXU.
    y = jnp.dot(act, w_ref[...], preferred_element_type=jnp.float32)
    res = (y + b_ref[...].astype(jnp.float32)).astype(out_ref.dtype)
    out_ref[...] = res[None, :, :]                      # block is (1, B, TN)


def _modulation_full_kernel(vec_ref, w_ref, b_ref, out_ref):
    """Fallback for dims not 128-aligned: single full-array block."""
    v = vec_ref[...].astype(jnp.float32)
    act = (v * jax.nn.sigmoid(v)).astype(w_ref.dtype)
    y = jnp.dot(act, w_ref[...], preferred_element_type=jnp.float32)
    out_ref[...] = (y + b_ref[...].astype(jnp.float32)).astype(out_ref.dtype)


def _pick_tile_n(dim: int, itemsize: int) -> Optional[int]:
    """Column-tile width: a multiple of 128 dividing dim, <= ~8 MiB per weight
    buffer (double-buffered by Pallas -> comfortably under v7x's 64 MiB VMEM)."""
    if dim % 128 != 0:
        return None
    budget = 8 * 1024 * 1024
    tn = min(dim, 1024)
    while tn > 128 and (dim % tn != 0 or dim * tn * itemsize > budget):
        tn -= 128
    return tn


def modulation_forward(
    vec: jax.Array,        # (B, dim)
    weight_t: jax.Array,   # (dim, mult*dim)  == torch weight.T
    bias: jax.Array,       # (mult*dim,)
    is_double: bool = False,
) -> Union[ModulationOut, Tuple[ModulationOut, ModulationOut]]:
    B, dim = vec.shape
    mult = 6 if is_double else 3
    assert weight_t.shape == (dim, mult * dim)
    assert bias.shape == (mult * dim,)

    w_itemsize = jnp.dtype(weight_t.dtype).itemsize
    v_itemsize = jnp.dtype(vec.dtype).itemsize
    tn = _pick_tile_n(dim, w_itemsize)

    if tn is not None:
        tpc = dim // tn  # column tiles per chunk
        cost = pl.CostEstimate(
            flops=2 * B * dim * mult * dim,
            transcendentals=B * dim,
            bytes_accessed=int(
                weight_t.size * w_itemsize
                + bias.size * jnp.dtype(bias.dtype).itemsize
                + vec.size * v_itemsize
                + mult * B * dim * v_itemsize
            ),
        )
        out = pl.pallas_call(
            _modulation_tiled_kernel,
            out_shape=jax.ShapeDtypeStruct((mult, B, dim), vec.dtype),
            grid_spec=pltpu.PrefetchScalarGridSpec(
                num_scalar_prefetch=0,
                grid=(mult, tpc),
                in_specs=[
                    # vec stays resident in VMEM across the whole grid.
                    pl.BlockSpec((B, dim), lambda c, j: (0, 0)),
                    # weight streamed as (dim, TN) column tiles.
                    pl.BlockSpec((dim, tn), lambda c, j: (0, c * tpc + j)),
                    # matching bias tile.
                    pl.BlockSpec((1, tn), lambda c, j: (0, c * tpc + j)),
                ],
                # chunk-major output: chunk c, columns j*TN .. (j+1)*TN of dim.
                out_specs=pl.BlockSpec((1, B, tn), lambda c, j: (c, 0, j)),
            ),
            compiler_params=pltpu.CompilerParams(
                dimension_semantics=("parallel", "parallel"),
                vmem_limit_bytes=48 * 1024 * 1024,
            ),
            cost_estimate=cost,
        )(vec, weight_t, bias[None, :])
        # Chunks are leading-axis slices (views) -- no jnp.split copies.
        chunks = [out[c][:, None, :] for c in range(mult)]
    else:
        # TODO(synk): dims not a multiple of 128 take the untiled path (fine for
        # tiny dims; production FLUX dims are 128-aligned and use the tiled path).
        out2d = pl.pallas_call(
            _modulation_full_kernel,
            out_shape=jax.ShapeDtypeStruct((B, mult * dim), vec.dtype),
            in_specs=[
                pl.BlockSpec((B, dim), lambda: (0, 0)),
                pl.BlockSpec((dim, mult * dim), lambda: (0, 0)),
                pl.BlockSpec((1, mult * dim), lambda: (0, 0)),
            ],
            out_specs=pl.BlockSpec((B, mult * dim), lambda: (0, 0)),
        )(vec, weight_t, bias[None, :])
        chunks = [out2d[:, c * dim:(c + 1) * dim][:, None, :] for c in range(mult)]

    if is_double:
        return ModulationOut(*chunks[:3]), ModulationOut(*chunks[3:])
    return ModulationOut(*chunks[:3])


def init_modulation_params(key, dim: int, is_double: bool = False, dtype=jnp.float32):
    """Deterministic synthetic parameters (PyTorch nn.Linear-style uniform init)."""
    mult = 6 if is_double else 3
    kw, kb = jax.random.split(key)
    bound = 1.0 / (dim ** 0.5)
    # torch weight has shape (mult*dim, dim); we store its transpose (dim, mult*dim).
    weight_t = jax.random.uniform(kw, (dim, mult * dim), dtype, -bound, bound)
    bias = jax.random.uniform(kb, (mult * dim,), dtype, -bound, bound)
    return weight_t, bias


def _reference_forward(vec, weight_t, bias, is_double):
    act = vec * jax.nn.sigmoid(vec)
    out = (act @ weight_t + bias)[:, None, :]
    mult = 6 if is_double else 3
    return jnp.split(out, mult, axis=-1)


if __name__ == "__main__":
    key = jax.random.PRNGKey(0)
    k_vec, k_p1, k_p2, k_vec3, k_p3 = jax.random.split(key, 5)

    # ---- tiled path (dim multiple of 128) ----
    B, dim = 2, 128
    vec = jax.random.normal(k_vec, (B, dim), jnp.float32)

    # single modulation
    w_t, b = init_modulation_params(k_p1, dim, is_double=False)
    mod = modulation_forward(vec, w_t, b, is_double=False)
    jax.block_until_ready(mod.gate)
    ref = _reference_forward(vec, w_t, b, is_double=False)
    for got, want in zip((mod.shift, mod.scale, mod.gate), ref):
        assert got.shape == (B, 1, dim)
        assert jnp.allclose(got, want, atol=1e-4, rtol=1e-4)

    # double modulation
    w_t2, b2 = init_modulation_params(k_p2, dim, is_double=True)
    mod1, mod2 = modulation_forward(vec, w_t2, b2, is_double=True)
    jax.block_until_ready(mod2.gate)
    ref2 = _reference_forward(vec, w_t2, b2, is_double=True)
    for got, want in zip(
        (mod1.shift, mod1.scale, mod1.gate, mod2.shift, mod2.scale, mod2.gate), ref2
    ):
        assert got.shape == (B, 1, dim)
        assert jnp.allclose(got, want, atol=1e-4, rtol=1e-4)

    # ---- fallback path (dim not multiple of 128) ----
    B3, dim3 = 2, 32
    vec3 = jax.random.normal(k_vec3, (B3, dim3), jnp.float32)
    w_t3, b3 = init_modulation_params(k_p3, dim3, is_double=False)
    mod3 = modulation_forward(vec3, w_t3, b3, is_double=False)
    jax.block_until_ready(mod3.gate)
    ref3 = _reference_forward(vec3, w_t3, b3, is_double=False)
    for got, want in zip((mod3.shift, mod3.scale, mod3.gate), ref3):
        assert got.shape == (B3, 1, dim3)
        assert jnp.allclose(got, want, atol=1e-4, rtol=1e-4)

    print("KERNEL_OK")
</pallas_src>

<mosaic_0001>
module attributes {stable_mosaic.version = 11 : i64} {
  func.func @_modulation_tiled_kernel(%arg0: i32, %arg1: i32, %arg2: memref<2x128xf32, #tpu.memory_space<vmem>>, %arg3: memref<128x128xf32, #tpu.memory_space<vmem>>, %arg4: memref<1x128xf32, #tpu.memory_space<vmem>>, %arg5: memref<1x2x128xf32, #tpu.memory_space<vmem>>) attributes {dimension_semantics = [#tpu.dimension_semantics<parallel>, #tpu.dimension_semantics<parallel>], iteration_bounds = array<i64: 3, 1>, scalar_prefetch = 0 : i64, scratch_operands = 0 : i64, tpu.core_type = #tpu.core_type<tc>, window_params = [{pipeline_mode = #tpu.pipeline_mode<synchronous>, transform_indices = @transform_0, window_bounds = array<i64: 2, 128>}, {transform_indices = @transform_1, window_bounds = array<i64: 128, 128>}, {transform_indices = @transform_2, window_bounds = array<i64: 1, 128>}, {transform_indices = @transform_3, window_bounds = array<i64: 1, 2, 128>}]} {
    %c0 = arith.constant 0 : index
    %c0_0 = arith.constant 0 : index
    %0 = vector.load %arg2[%c0, %c0_0] : memref<2x128xf32, #tpu.memory_space<vmem>>, vector<2x128xf32>
    %1 = arith.negf %0 : vector<2x128xf32>
    %2 = math.exp %1 : vector<2x128xf32>
    %cst = arith.constant 1.000000e+00 : f32
    %3 = vector.broadcast %cst : f32 to vector<2x128xf32>
    %4 = arith.addf %3, %2 : vector<2x128xf32>
    %5 = arith.divf %3, %4 : vector<2x128xf32>
    %6 = arith.mulf %0, %5 : vector<2x128xf32>
    %c0_1 = arith.constant 0 : index
    %c0_2 = arith.constant 0 : index
    %7 = vector.load %arg3[%c0_1, %c0_2] : memref<128x128xf32, #tpu.memory_space<vmem>>, vector<128x128xf32>
    %cst_3 = arith.constant dense<0.000000e+00> : vector<2x128xf32>
    %8 = tpu.matmul %6, %7, %cst_3 {dimension_numbers = #tpu.dot_dimension_numbers<[1], [0], [0], [1], [0, 0, 1, 1], [], []>} : vector<2x128xf32>, vector<128x128xf32>, vector<2x128xf32> -> vector<2x128xf32>
    %c0_4 = arith.constant 0 : index
    %c0_5 = arith.constant 0 : index
    %9 = vector.load %arg4[%c0_4, %c0_5] : memref<1x128xf32, #tpu.memory_space<vmem>>, vector<1x128xf32>
    %10 = vector.broadcast %9 : vector<1x128xf32> to vector<2x128xf32>
    %11 = arith.addf %8, %10 : vector<2x128xf32>
    %12 = vector.shape_cast %11 : vector<2x128xf32> to vector<1x2x128xf32>
    %c0_6 = arith.constant 0 : index
    %c0_7 = arith.constant 0 : index
    %c0_8 = arith.constant 0 : index
    %13 = vector.load %arg5[%c0_6, %c0_7, %c0_8] : memref<1x2x128xf32, #tpu.memory_space<vmem>>, vector<1x2x128xf32>
    tpu.vector_store %arg5[%c0_6, %c0_7, %c0_8], %12 {strides = array<i32>} : memref<1x2x128xf32, #tpu.memory_space<vmem>>, vector<1x2x128xf32>,
    return
  }
  func.func @transform_0(%arg0: i32, %arg1: i32) -> (i32, i32) {
    %c0_i32 = arith.constant 0 : i32
    %c0_i32_0 = arith.constant 0 : i32
    %c0_i32_1 = arith.constant 0 : i32
    return %c0_i32, %c0_i32_0 : i32, i32
  }
  func.func @transform_1(%arg0: i32, %arg1: i32) -> (i32, i32) {
    %c1_i32 = arith.constant 1 : i32
    %0 = arith.muli %arg0, %c1_i32 : i32
    %1 = arith.addi %0, %arg1 : i32
    %c0_i32 = arith.constant 0 : i32
    %c0_i32_0 = arith.constant 0 : i32
    return %c0_i32, %1 : i32, i32
  }
  func.func @transform_2(%arg0: i32, %arg1: i32) -> (i32, i32) {
    %c1_i32 = arith.constant 1 : i32
    %0 = arith.muli %arg0, %c1_i32 : i32
    %1 = arith.addi %0, %arg1 : i32
    %c0_i32 = arith.constant 0 : i32
    %c0_i32_0 = arith.constant 0 : i32
    return %c0_i32, %1 : i32, i32
  }
  func.func @transform_3(%arg0: i32, %arg1: i32) -> (i32, i32, i32) {
    %c0_i32 = arith.constant 0 : i32
    %c0_i32_0 = arith.constant 0 : i32
    return %arg0, %c0_i32, %arg1 : i32, i32, i32
  }
}

</mosaic_0001>

<bundles_post_ra>
// kernel: tpu_custom_call.1
= control target key start
LH: loop header
LB: loop body
LE: loop exit
PB: predicated region body
PF: predicated region fallthrough
CT: control target
= control target key end

     0   :  { %8 = vsyncpa [#allocation3], 0  ;;  %s943_s0 = inlined_call_operand.hbm [shape: f32[2,128], index: 0, kind: input, shape index: {}]   ;;  %s944_s1 = inlined_call_operand.hbm [shape: f32[128,384], index: 1, kind: input, shape index: {}]   ;;  %s945_s2 = inlined_call_operand.hbm [shape: f32[1,384], index: 2, kind: input, shape index: {}]   ;;  %s946_s3 = inlined_call_operand.hbm [shape: f32[3,2,128], index: 3, kind: output, shape index: {}]  }
   0x1   :  { %9 = vsyncpa [#allocation6], 0 }
   0x2   :  { %11 = vsyncpa [#allocation6 + $0x1], 0 }
   0x3   :  { %12 = vsyncpa [#allocation4], 0 }
   0x4   :  { %14 = vsyncpa [#allocation4 + $0x1], 0  ;;  %s751_s12 = smov 0   ;;  %s753_s13 = smov 0  }
   0x5   :  { %s755_s14 = smov 0   ;;  %s757_s15 = smov 0  }
   0x6   :  { %s759_s16 = smov 0   ;;  %s761_s17 = smov 0  }
   0x7 LB: > { %s32_s18 = sadd.s32 1, %s721_s16  ;;  %s62_s19 = sadd.s32 1, %s713_s14  ;;  %s725_s17 = sphi %s761_s17, %s20_s17   ;;  %s721_s16 = sphi %s759_s16, %s957_s16   ;;  %s717_s15 = sphi %s757_s15, %s956_s15   ;;  %s713_s14 = sphi %s755_s14, %s955_s14   ;;  %s709_s13 = sphi %s753_s13, %s954_s13   ;;  %s705_s12 = sphi %s751_s12, %s953_s12  }
   0x8   : > { %p34_p0 = scmp.ge.s32.totalorder %s32_s18, 3  ;;  %p69_p1 = scmp.ne.s32.totalorder %s713_s14, %s709_s13 }
   0x9   : > { %p70_p2 = scmp.eq.s32.totalorder %s725_s17, 0  ;;  %p489_p4 = scmp.lt.s32.totalorder %s725_s17, 3 }
   0xa   : > { %s959_s18 = smov (%p34_p0, %s32_s18), 0  ;;  %s167_s22 = sand.u32 1, %s725_s17  }
   0xb   : > { %p791_p3 = por %p70_p2, %p69_p1  ;;  %s59_s21 = ssub.s32 %s721_s16, %s959_s18 }
   0xc   : > { %p60_p5 = scmp.eq.s32.totalorder %s59_s21, 0  ;;  %s169_s23 = sand.u32 1, %s713_s14  }
   0xd   : > { %s453_s24 = sshll.u32 %s721_s16, 3  ;;  %s452_s26 = sshll.u32 %s169_s23, 7 }
   0xe   : > { %s802_s25 = scalar_select %p60_p5, %s713_s14, %s62_s19  }
   0xf   : > { %s176_s29 = scalar_lea.hbm %s944_s1, %s453_s24  ;;  %s171_s4 = scalar_lea.vmem [#allocation5], %s452_s26 }
  0x10   : > { %s177_s30 = sshll.u32 %s176_s29, 4  ;;  %s179_s5 = sshll.u32 %s171_s4, 4  ;;  %s178_s30 = int_to_ptr.hbm [resolvable:$true] %s177_s30  ;;  %s180_s5 = int_to_ptr.vmem [resolvable:$true] %s179_s5 }
  0x11   : > { %p813_p6 = pnand %p489_p4, %p791_p3  ;;  %s817_s7 = scalar_lea.sflag [#allocation6], %s167_s22 }
  0x12   : > { %s727_s8 = smov 384   ;;  %s728_s9 = smov 128  }
  0x13   : > { %s729_s10 = smov 8   ;;  %s823_s11 = sadd.s32 4294967295, %s725_s17  }
  0x14   : > { %480 = dma.hbm_to_vmem [thread:$0]  (!%p813_p6), %s178_s30, 2048, %s180_s5, %s817_s7, %s727_s8, %s728_s9, %s729_s10  }
  0x15   : > { %s448_s19 = sadd.s32 4294967294, %s725_s17   ;;  %p75_p7 = scmp.ne.s32.totalorder %s709_s13, %s705_s12 }
  0x16   : > { %p76_p8 = scmp.eq.s32.totalorder %s823_s11, 0  ;;  %p129_p9 = scmp.eq.s32.totalorder %s823_s11, 2 }
  0x17   : > { %p135_p10 = scmp.eq.s32.totalorder %s448_s19, 2  ;;  %p449_p12 = scmp.ge.s32.totalorder %s725_s17, 1 }
  0x18   : > { %p832_p11 = por %p76_p8, %p75_p7  ;;  %p840_p13 = por %p129_p9, %p69_p1 }
  0x19   : > { %p844_p0 = por %p135_p10, %p75_p7  ;;  %p142_p2 = scmp.lt.s32.totalorder %s725_s17, 4 }
  0x1a   : > { %s154_s27 = sshll.u32 %s943_s0, 4  ;;  %s730_s29 = smov [#allocation2]   ;;  %s155_s27 = int_to_ptr.hbm [resolvable:$true] %s154_s27 }
  0x1b   : > { %p852_p3 = pnand %p449_p12, %p142_p2  ;;  %s156_s30 = sshll.u32 %s730_s29, 4  ;;  %s157_s30 = int_to_ptr.vmem [resolvable:$true] %s156_s30 }
  0x1c   : > { %s196_s8 = scalar_lea.hbm %s945_s2, %s721_s16  ;;  %s192_s9 = scalar_lea.vmem [#allocation7], %s169_s23 }
  0x1d   : > { %p473_p1 = pneg %p852_p3  ;;  %s200_s10 = sshll.u32 %s192_s9, 4  ;;  %s201_s10 = int_to_ptr.vmem [resolvable:$true] %s200_s10 }
  0x1e   : > { %s198_s19 = sshll.u32 %s196_s8, 4  ;;  %209 = sbr.rel (%p852_p3) target bundleno = 203 (0xcb), region = 32  ;;  %s199_s19 = int_to_ptr.hbm [resolvable:$true] %s198_s19 }
  0x1f   : > { %p474_p4 = pnand %p473_p1, %p76_p8 }
  0x20   : > { %483 = dma.hbm_to_vmem [thread:$0]  (!%p813_p6), %s199_s19, 16, %s201_s10, %s817_s7  }
  0x21   : > { %476 = dma.hbm_to_vmem [thread:$0]  (!%p474_p4), %s155_s27, 32, %s157_s30, [#allocation3]  }
  0x23   : > { %692 = dma.done.wait (%p76_p8), [#allocation3], 32  }
  0x24   : > { %694 = vsyncadd (%p76_p8), [#allocation3], 4294967264  ;;  %s216_s23 = sand.u32 1, %s823_s11   ;;  %s877_s24 = sand.u32 1, %s709_s13  }
  0x25   : > { %s456_s26 = sshll.u32 %s877_s24, 7  ;;  %s217_s27 = scalar_lea.sflag [#allocation6], %s216_s23 }
  0x26   : > { %s880_s6 = scalar_lea.vmem [#allocation5], %s456_s26 }
  0x27   : > { %696 = dma.done.wait (%p832_p11), %s217_s27, 2064  }
  0x28   : > { %698 = vsyncadd (%p832_p11), %s217_s27, 4294965232  ;;  %v295_v0 = vld [vmem:[%s880_s6 + $0x78] sm:$0xff]  ;;  %v294_v1 = vld [vmem:[%s880_s6 + $0x70] sm:$0xff]  ;;  %s229_s7 = scalar_lea.vmem [#allocation7], %s877_s24  ;;  %s457_s11 = sshll.u32 %s877_s24, 1 }
  0x29   : > { %300 = vmatpush.msra.mxu0 %v295_v0  ;;  %v293_v2 = vld [vmem:[%s880_s6 + $0x68] sm:$0xff]  ;;  %v292_v3 = vld [vmem:[%s880_s6 + $0x60] sm:$0xff]  ;;  %v259_v4 = vld [vmem:[#allocation2] sm:$0x3]  ;;  %s460_s20 = sshll.u32 %s717_s15, 1  ;;  %s256_s4 = scalar_lea.vmem [#allocation8], %s457_s11 }
  0x2a   : > { %v291_v5 = vld [vmem:[%s880_s6 + $0x58] sm:$0xff]  ;;  %v458_v6 = vmul.f32 -1.442695, %v259_v4  ;;  %v290_v7 = vld [vmem:[%s880_s6 + $0x50] sm:$0xff]  ;;  %v289_v8 = vld [vmem:[%s880_s6 + $0x48] sm:$0xff]  ;;  %s333_s30 = scalar_lea.hbm %s946_s3, %s460_s20  ;;  %s335_s5 = sshll.u32 %s256_s4, 4  ;;  %s336_s5 = int_to_ptr.vmem [resolvable:$true] %s335_s5 }
  0x2b   : > { %301 = vmatpush.msra.mxu0 %v294_v1  ;;  %v288_v9 = vld [vmem:[%s880_s6 + $0x40] sm:$0xff]  ;;  %v287_v11 = vld [vmem:[%s880_s6 + $0x38] sm:$0xff]  ;;  %v286_v13 = vld [vmem:[%s880_s6 + $0x30] sm:$0xff]  ;;  %s337_s8 = sshll.u32 %s333_s30, 4  ;;  %s322_s9 = scalar_lea.sflag [#allocation4], %s877_s24  ;;  %s338_s8 = int_to_ptr.hbm [resolvable:$true] %s337_s8 }
  0x2c   : > { %545 = vpow2.f32 %v458_v6  ;;  %v285_v14 = vld [vmem:[%s880_s6 + $0x28] sm:$0xff]  ;;  %v284_v15 = vld [vmem:[%s880_s6 + $0x20] sm:$0xff]  ;;  %v283_v16 = vld [vmem:[%s880_s6 + $0x18] sm:$0xff]  ;;  %s653_s10 = sshra.s32 %s338_s8, 4  ;;  %s659_s26 = scalar_lea.hbm %s946_s3, 6  ;;  %s654_s10 = int_to_ptr.hbm [resolvable:$true] %s653_s10 }
  0x2d   : > { %302 = vmatpush.msra.mxu0 %v293_v2  ;;  %v282_v18 = vld [vmem:[%s880_s6 + $0x10] sm:$0xff]  ;;  %v281_v21 = vld [vmem:[%s880_s6 + $0x8] sm:$0xff]  ;;  %v280_v24 = vld [vmem:[%s880_s6] sm:$0xff]  ;;  %s655_s19 = scalar_lea.hbm %s654_s10, 2  ;;  %p660_p8 = scmp.lt.s32.totalorder %s654_s10, %s946_s3 }
  0x2e   : > { %v544_v31 = vld [vmem:[%s229_s7] ss:$0 sm:$0xff]  ;;  %p656_p5 = scmp.ne.s32.totalorder %s654_s10, %s655_s19  ;;  %p661_p9 = scmp.lt.s32.totalorder %s659_s26, %s655_s19 }
  0x2f   : > { %303 = vmatpush.msra.mxu0 %v292_v3 }
  0x30   : > { %p657_p6 = pnand %p656_p5, %p840_p13  ;;  %p662_p10 = por %p661_p9, %p660_p8 }
  0x31   : > { %304 = vmatpush.msra.mxu0 %v291_v5 }
  0x32   : > { %v546_v10 = vpop.eup %545  ;;  %p658_p7 = pneg %p657_p6 }
  0x33   : > { %305 = vmatpush.msra.mxu0 %v290_v7  ;;  %v263_v12 = vadd.f32 1.0, %v546_v10 }
  0x34   : > { %p663_p11 = pnand %p662_p10, %p658_p7 }
  0x35   : > { %306 = vmatpush.msra.mxu0 %v289_v8  ;;  %547 = vrcp.f32 %v263_v12  ;;  %v275_v20 = vand.u32 2147483648, %v263_v12  ;;  %vm269_vm0 = vweird.f32 %v263_v12  ;;  %v273_v23 = vand.u32 2147483647, %v263_v12 }
  0x37   : > { %307 = vmatpush.msra.mxu0 %v288_v9  ;;  %v276_v26 = vor.u32 1.1754944e-38, %v275_v20  ;;  %vm274_vm3 = vcmp.eq.f32.partialorder %v273_v23, 8.507059e+37 }
  0x39   : > { %308 = vmatpush.msra.mxu0 %v287_v11 }
  0x3b   : > { %309 = vmatpush.msra.mxu0 %v286_v13  ;;  %v548_v17 = vpop.eup %547 }
  0x3c   : > { %v265_v19 = vmul.f32 %v548_v17, %v263_v12  ;;  %vm270_vm1 = vweird.f32 %v548_v17 }
  0x3d   : > { %310 = vmatpush.msra.mxu0 %v285_v14  ;;  %vm271_vm2 = vmor %vm269_vm0, %vm270_vm1 }
  0x3e   : > { %v266_v22 = vsub.f32 1.0, %v265_v19 }
  0x3f   : > { %311 = vmatpush.msra.mxu0 %v284_v15 }
  0x40   : > { %v267_v25 = vmul.f32 %v548_v17, %v266_v22 }
  0x41   : > { %312 = vmatpush.msra.mxu0 %v283_v16 }
  0x42   : > { %v268_v27 = vadd.f32 %v548_v17, %v267_v25 }
  0x43   : > { %313 = vmatpush.msra.mxu0 %v282_v18 }
  0x44   : > { %v272_v28 = vsel %vm271_vm2, %v548_v17, %v268_v27 }
  0x45   : > { %314 = vmatpush.msra.mxu0 %v281_v21  ;;  %v277_v29 = vsel %vm274_vm3, %v276_v26, %v272_v28 }
  0x46   : > { %v279_v30 = vmul.f32 %v277_v29, %v259_v4 }
  0x47   : > { %315 = vmatpush.msra.mxu0 %v280_v24 }
  0x48   : > { %316 = vmatmul.f32.vlgmr.msra.gmra.mxu0 %v279_v30 }
  0xc5   : > { %v317_v32 = vpop.f32.mrf.mxu0 }
  0xc6   : > { %v318_v33 = vadd.f32 %v544_v31, %v317_v32 }
  0xc8   : > { %320 = vst [vmem:[%s256_s4] sm:$0x3] %v318_v33 }
  0xc9   : > { %666 = shalt.err (!%p663_p11)
}
  0xca   : > { %471 = dma.vmem_to_hbm [thread:$0]  (%p840_p13), %s336_s5, 32, %s338_s8, %s322_s9  }
  0xcb PF: > { %p491_p12 = scmp.ge.s32.totalorder %s725_s17, 2  ;;  %s349_s24 = sand.u32 1, %s705_s12  }
  0xcc   : > { %s350_s7 = scalar_lea.sflag [#allocation4], %s349_s24 }
  0xcd   : > { %p485_p2 = pnand %p491_p12, %p844_p0 }
  0xcf   : > { %p486_p3 = pneg %p485_p2 }
  0xd1   : > { %700 = dma.done.wait (%p486_p3), %s350_s7, 32  }
  0xd2   : > { %702 = vsyncadd (%p486_p3), %s350_s7, 4294967264  ;;  %s20_s17 = sadd.s32 1, %s725_s17   ;;  %s953_s12 = smov %s709_s13 }
  0xd3   : > { %p17_p1 = scmp.ge.s32.totalorder %s20_s17, 5   ;;  %s954_s13 = smov %s713_s14 }
  0xd4   : > { %s955_s14 = smov %s802_s25  ;;  %s956_s15 = smov %s721_s16 }
  0xd5   : > { %s957_s16 = smov %s959_s18  ;;  %19 = sbr.rel (!%p17_p1) target bundleno = 7 (0x7), region = 93 }
  0xda   :  { %356 = vsyncpa [#allocation3], 1 }
  0xdb   :  { %358 = vsyncpa [#allocation3 + $0x1], 1 }
  0xdc   :  { %359 = vsyncpa [#allocation6], 1 }
  0xdd   :  { %361 = vsyncpa [#allocation6 + $0x1], 1 }
  0xde   :  { %362 = vsyncpa [#allocation4], 1 }
  0xdf   :  { %364 = vsyncpa [#allocation4 + $0x1], 1 }

</bundles_post_ra>
